<compile_context>
chip_gen: v6e
topology: v6e:2x2x1
jax: 0.10.0
libtpu: 0.0.40
codegen_flags: <defaults>
</compile_context>

<pallas_src>
import jax
import jax.numpy as jnp
from jax.experimental import pallas as pl
from jax.experimental.pallas import tpu as pltpu


LANE = 128


# ---------------------------------------------------------------------------
# Small helpers
# ---------------------------------------------------------------------------
def _round_up(x, m):
    return ((x + m - 1) // m) * m


def _sublane(dtype):
    """Minimum sublane packing for a dtype (second-to-last dim alignment)."""
    itemsize = jnp.dtype(dtype).itemsize
    return {4: 8, 2: 16, 1: 32}.get(itemsize, 8)


def _largest_aligned_divisor(dim, align, cap):
    """Largest t <= cap with t % align == 0 and dim % t == 0 (dim % align == 0)."""
    cap = max(align, min(cap, dim))
    best = align
    t = align
    while t <= cap:
        if dim % t == 0:
            best = t
        t += align
    return best


# ---------------------------------------------------------------------------
# Parameter construction (matches torch.nn.init.orthogonal_ semantics)
# ---------------------------------------------------------------------------
def _orthogonal_init(key, shape, dtype=jnp.float32):
    """Orthogonal init for a [out_features, in_features] weight (torch convention)."""
    rows, cols = shape
    flat_shape = (rows, cols) if rows >= cols else (cols, rows)
    a = jax.random.normal(key, flat_shape, dtype=jnp.float32)
    q, r = jnp.linalg.qr(a)
    d = jnp.sign(jnp.diagonal(r))
    d = jnp.where(d == 0, 1.0, d)      # robustness: never zero a column
    q = q * d[None, :]
    if rows < cols:
        q = q.T
    return q.astype(dtype)


def make_orthogonal_linear_params(key, in_features, out_features, dtype=jnp.float32):
    """Build OrthogonalLinear params.

    The weight is stored pre-transposed as [K, N] and pre-padded ONCE to lane (128)
    multiples, so the forward pass never transposes or re-pads the weight in HBM.
    `dtype=jnp.bfloat16` stores weights/bias in bf16 (MXU fast path); accumulation
    inside the kernel is always f32.
    """
    weight_nk = _orthogonal_init(key, (out_features, in_features), jnp.float32)  # [N, K]
    w_kn = weight_nk.T                                                           # [K, N]
    kp = _round_up(in_features, LANE)
    np_ = _round_up(out_features, LANE)
    w_kn = jnp.pad(w_kn, ((0, kp - in_features), (0, np_ - out_features))).astype(dtype)
    bias = jnp.zeros((1, np_), dtype=dtype)
    return {
        "w_kn": w_kn,                 # [Kp, Np], lane-aligned, pre-transposed
        "bias": bias,                 # [1, Np]
        "in_features": in_features,
        "out_features": out_features,
    }


# ---------------------------------------------------------------------------
# Kernels
# ---------------------------------------------------------------------------
def _mm_bias_accum_out_kernel(x_ref, w_ref, b_ref, o_ref):
    """f32 output path: accumulate directly into the resident output block."""
    k = pl.program_id(2)

    @pl.when(k == 0)
    def _():
        o_ref[...] = jnp.broadcast_to(b_ref[...].astype(jnp.float32), o_ref.shape)

    o_ref[...] += jnp.dot(x_ref[...], w_ref[...], preferred_element_type=jnp.float32)


def _mm_bias_scratch_kernel(x_ref, w_ref, b_ref, o_ref, acc_ref):
    """Narrow output dtype: f32 VMEM accumulator + one cast in the epilogue."""
    k = pl.program_id(2)

    @pl.when(k == 0)
    def _():
        acc_ref[...] = jnp.zeros_like(acc_ref)

    acc_ref[...] += jnp.dot(x_ref[...], w_ref[...], preferred_element_type=jnp.float32)

    @pl.when(k == pl.num_programs(2) - 1)
    def _():
        o_ref[...] = (acc_ref[...] + b_ref[...].astype(jnp.float32)).astype(o_ref.dtype)


# ---------------------------------------------------------------------------
# Wrapper
# ---------------------------------------------------------------------------
def orthogonal_linear(x, params, *, tm=512, tn=512, tk=1024, out_dtype=None):
    """x: [M, in_features]; params from make_orthogonal_linear_params()."""
    w_kn = params["w_kn"]
    bias = params["bias"]
    k_feat = params["in_features"]
    n_feat = params["out_features"]

    M, Kx = x.shape
    assert Kx == k_feat, f"in_features mismatch: {Kx} vs {k_feat}"

    Kp, Np = w_kn.shape
    # Fallback for hand-built (unpadded) weights; the params factory pre-pads.
    if Kp % LANE or Np % LANE:
        kp2, np2 = _round_up(Kp, LANE), _round_up(Np, LANE)
        w_kn = jnp.pad(w_kn, ((0, kp2 - Kp), (0, np2 - Np)))
        bias = jnp.pad(bias, ((0, 0), (0, np2 - Np)))
        Kp, Np = kp2, np2

    out_dtype = jnp.dtype(x.dtype) if out_dtype is None else jnp.dtype(out_dtype)

    # Feed the MXU the weight dtype (e.g. bf16); accumulation stays f32 in-kernel.
    if x.dtype != w_kn.dtype:
        x = x.astype(w_kn.dtype)

    sub = max(_sublane(x.dtype), _sublane(out_dtype))
    Mp = _round_up(M, sub)

    # Tiles = largest aligned divisors of the padded dims (no extra padded compute).
    tm = _largest_aligned_divisor(Mp, sub, tm)
    tn = _largest_aligned_divisor(Np, LANE, tn)
    tk = _largest_aligned_divisor(Kp, LANE, tk)

    # v7x megacore: keep >= 2 parallel output blocks on non-trivial problems.
    if (Mp // tm) * (Np // tn) == 1 and Mp * Np >= (1 << 18):
        tn2 = _largest_aligned_divisor(Np, LANE, max(LANE, Np // 2))
        if Np // tn2 >= 2:
            tn = tn2
        else:
            tm2 = _largest_aligned_divisor(Mp, sub, max(sub, Mp // 2))
            if Mp // tm2 >= 2:
                tm = tm2

    x_p = x if (Mp == M and Kp == Kx) else jnp.pad(x, ((0, Mp - M), (0, Kp - Kx)))

    grid = (Mp // tm, Np // tn, Kp // tk)
    use_scratch = out_dtype != jnp.dtype(jnp.float32)

    x_it = jnp.dtype(x_p.dtype).itemsize
    w_it = jnp.dtype(w_kn.dtype).itemsize
    b_it = jnp.dtype(bias.dtype).itemsize
    o_it = out_dtype.itemsize

    # Honest tiled HBM traffic: x re-read Np/tn times, w re-read Mp/tm times.
    bytes_accessed = (
        Mp * Kp * x_it * (Np // tn)
        + Kp * Np * w_it * (Mp // tm)
        + Np * b_it
        + Mp * Np * o_it
    )
    cost = pl.CostEstimate(
        flops=2 * Mp * Np * Kp, transcendentals=0, bytes_accessed=bytes_accessed
    )

    # Double-buffered tile footprint (+ f32 scratch accumulator when used).
    vmem_needed = (
        2 * (tm * tk * x_it + tk * tn * w_it + tm * tn * o_it + tn * b_it)
        + (tm * tn * 4 if use_scratch else 0)
    )
    vmem_limit = int(min(max(2 * vmem_needed, 32 << 20), 64 << 20))

    kernel = _mm_bias_scratch_kernel if use_scratch else _mm_bias_accum_out_kernel
    scratch = [pltpu.VMEM((tm, tn), jnp.float32)] if use_scratch else []

    # TODO(synk): for very skinny batches an x-resident (stream-x-once) layout would
    # further cut activation re-reads; with Mp//tm == 1 the weight is already read once.
    out = pl.pallas_call(
        kernel,
        out_shape=jax.ShapeDtypeStruct((Mp, Np), out_dtype),
        grid_spec=pltpu.PrefetchScalarGridSpec(
            num_scalar_prefetch=0,
            grid=grid,
            in_specs=[
                pl.BlockSpec((tm, tk), lambda i, j, k: (i, k)),   # activation tile
                pl.BlockSpec((tk, tn), lambda i, j, k: (k, j)),   # weight tile
                pl.BlockSpec((1, tn), lambda i, j, k: (0, j)),    # bias (j only)
            ],
            out_specs=pl.BlockSpec((tm, tn), lambda i, j, k: (i, j)),
            scratch_shapes=scratch,
        ),
        compiler_params=pltpu.CompilerParams(
            dimension_semantics=("parallel", "parallel", "arbitrary"),
            vmem_limit_bytes=vmem_limit,
        ),
        cost_estimate=cost,
    )(x_p, w_kn, bias)

    if Mp != M or Np != n_feat:
        out = out[:M, :n_feat]
    return out


# ---------------------------------------------------------------------------
# Demo / correctness checks
# ---------------------------------------------------------------------------
if __name__ == "__main__":
    root = jax.random.PRNGKey(0)

    def check(batch, in_features, out_features, key, param_dtype=jnp.float32,
              out_dtype=None, tol=1e-3):
        k_w, k_x = jax.random.split(key)
        params = make_orthogonal_linear_params(k_w, in_features, out_features,
                                               dtype=param_dtype)
        x = jax.random.normal(k_x, (batch, in_features), dtype=jnp.float32)

        y = orthogonal_linear(x, params, out_dtype=out_dtype)
        y = jax.block_until_ready(y)
        assert y.shape == (batch, out_features)

        # Reference in f32 using the same (possibly bf16-rounded) params / inputs.
        w_ref = params["w_kn"][:in_features, :out_features].astype(jnp.float32)
        b_ref = params["bias"][0, :out_features].astype(jnp.float32)
        x_ref = x.astype(param_dtype).astype(jnp.float32)
        y_ref = (
            jnp.dot(x_ref, w_ref, precision=jax.lax.Precision.HIGHEST) + b_ref[None, :]
        )
        err = float(jnp.max(jnp.abs(y.astype(jnp.float32) - y_ref)))
        assert jnp.allclose(y.astype(jnp.float32), y_ref, atol=tol, rtol=tol), err

    k1, k2, k3, k4 = jax.random.split(root, 4)
    # Small shape consistent with nn.Linear(in_features=32, out_features=64).
    check(batch=8, in_features=32, out_features=64, key=k1)
    # Non-power-of-two widths: exercises K zero-padding and divisor-based tn (384).
    check(batch=256, in_features=320, out_features=384, key=k2)
    # Exercises a multi-step K reduction (grid k > 1).
    check(batch=64, in_features=1280, out_features=256, key=k3)
    # bf16 weights/activations, bf16 output (scratch-accumulator kernel path).
    check(batch=256, in_features=320, out_features=384, key=k4,
          param_dtype=jnp.bfloat16, out_dtype=jnp.bfloat16, tol=5e-2)

    print("KERNEL_OK")
</pallas_src>

<mosaic_0001>
module attributes {stable_mosaic.version = 11 : i64} {
  func.func @_mm_bias_accum_out_kernel(%arg0: i32, %arg1: i32, %arg2: i32, %arg3: memref<8x128xf32, #tpu.memory_space<vmem>>, %arg4: memref<128x128xf32, #tpu.memory_space<vmem>>, %arg5: memref<1x128xf32, #tpu.memory_space<vmem>>, %arg6: memref<8x128xf32, #tpu.memory_space<vmem>>) attributes {dimension_semantics = [#tpu.dimension_semantics<parallel>, #tpu.dimension_semantics<parallel>, #tpu.dimension_semantics<arbitrary>], iteration_bounds = array<i64: 1, 1, 1>, scalar_prefetch = 0 : i64, scratch_operands = 0 : i64, tpu.core_type = #tpu.core_type<tc>, window_params = [{transform_indices = @transform_0, window_bounds = array<i64: 8, 128>}, {transform_indices = @transform_1, window_bounds = array<i64: 128, 128>}, {transform_indices = @transform_2, window_bounds = array<i64: 1, 128>}, {transform_indices = @transform_3, window_bounds = array<i64: 8, 128>}]} {
    %c0_i32 = arith.constant 0 : i32
    %0 = arith.cmpi eq, %arg2, %c0_i32 : i32
    %1 = arith.extui %0 : i1 to i32
    %c0_i32_0 = arith.constant 0 : i32
    %2 = arith.cmpi ne, %1, %c0_i32_0 : i32
    scf.if %2 {
      %c0_8 = arith.constant 0 : index
      %c0_9 = arith.constant 0 : index
      %9 = vector.load %arg5[%c0_8, %c0_9] : memref<1x128xf32, #tpu.memory_space<vmem>>, vector<1x128xf32>
      %10 = vector.shape_cast %9 : vector<1x128xf32> to vector<1x128xf32>
      %11 = vector.broadcast %10 : vector<1x128xf32> to vector<8x128xf32>
      %c0_10 = arith.constant 0 : index
      %c0_11 = arith.constant 0 : index
      %12 = vector.load %arg6[%c0_10, %c0_11] : memref<8x128xf32, #tpu.memory_space<vmem>>, vector<8x128xf32>
      tpu.vector_store %arg6[%c0_10, %c0_11], %11 {strides = array<i32>} : memref<8x128xf32, #tpu.memory_space<vmem>>, vector<8x128xf32>,
    } else {
    }
    %c0 = arith.constant 0 : index
    %c0_1 = arith.constant 0 : index
    %3 = vector.load %arg6[%c0, %c0_1] : memref<8x128xf32, #tpu.memory_space<vmem>>, vector<8x128xf32>
    %c0_2 = arith.constant 0 : index
    %c0_3 = arith.constant 0 : index
    %4 = vector.load %arg3[%c0_2, %c0_3] : memref<8x128xf32, #tpu.memory_space<vmem>>, vector<8x128xf32>
    %c0_4 = arith.constant 0 : index
    %c0_5 = arith.constant 0 : index
    %5 = vector.load %arg4[%c0_4, %c0_5] : memref<128x128xf32, #tpu.memory_space<vmem>>, vector<128x128xf32>
    %cst = arith.constant dense<0.000000e+00> : vector<8x128xf32>
    %6 = tpu.matmul %4, %5, %cst {dimension_numbers = #tpu.dot_dimension_numbers<[1], [0], [0], [1], [0, 0, 1, 1], [], []>} : vector<8x128xf32>, vector<128x128xf32>, vector<8x128xf32> -> vector<8x128xf32>
    %7 = arith.addf %3, %6 : vector<8x128xf32>
    %c0_6 = arith.constant 0 : index
    %c0_7 = arith.constant 0 : index
    %8 = vector.load %arg6[%c0_6, %c0_7] : memref<8x128xf32, #tpu.memory_space<vmem>>, vector<8x128xf32>
    tpu.vector_store %arg6[%c0_6, %c0_7], %7 {strides = array<i32>} : memref<8x128xf32, #tpu.memory_space<vmem>>, vector<8x128xf32>,
    return
  }
  func.func @transform_0(%arg0: i32, %arg1: i32, %arg2: i32) -> (i32, i32) {
    %c0_i32 = arith.constant 0 : i32
    return %arg0, %arg2 : i32, i32
  }
  func.func @transform_1(%arg0: i32, %arg1: i32, %arg2: i32) -> (i32, i32) {
    %c0_i32 = arith.constant 0 : i32
    return %arg2, %arg1 : i32, i32
  }
  func.func @transform_2(%arg0: i32, %arg1: i32, %arg2: i32) -> (i32, i32) {
    %c0_i32 = arith.constant 0 : i32
    %c0_i32_0 = arith.constant 0 : i32
    return %c0_i32, %arg1 : i32, i32
  }
  func.func @transform_3(%arg0: i32, %arg1: i32, %arg2: i32) -> (i32, i32) {
    %c0_i32 = arith.constant 0 : i32
    return %arg0, %arg1 : i32, i32
  }
}

</mosaic_0001>

<bundles_post_ra>
// kernel: tpu_custom_call.1
= control target key start
LH: loop header
LB: loop body
LE: loop exit
PB: predicated region body
PF: predicated region fallthrough
CT: control target
= control target key end

     0   :  { %8 = vsyncpa [#allocation3], 0  ;;  %s324_s0 = inlined_call_operand.hbm [shape: f32[8,128], index: 0, kind: input, shape index: {}]   ;;  %s325_s1 = inlined_call_operand.hbm [shape: f32[128,128], index: 1, kind: input, shape index: {}]   ;;  %s326_s2 = inlined_call_operand.vmem [shape: f32[1,128], index: 2, kind: input, shape index: {}]   ;;  %s327_s3 = inlined_call_operand.hbm [shape: f32[8,128], index: 3, kind: output, shape index: {}]  }
   0x1   :  { %9 = vsyncpa [#allocation6], 0 }
   0x2   :  { %10 = vsyncpa [#allocation4], 0  ;;  %s285_s12 = smov [#allocation2]   ;;  %s286_s14 = smov [#allocation5]  }
   0x3   :  { %s17_s13 = sshll.u32 %s285_s12, 4  ;;  %s26_s15 = sshll.u32 %s286_s14, 4  ;;  %s18_s13 = int_to_ptr.vmem [resolvable:$true] %s17_s13  ;;  %s27_s15 = int_to_ptr.vmem [resolvable:$true] %s26_s15 }
   0x4   :  { %s227_s16 = scalar_lea.vmem %s18_s13, 128  ;;  %p232_p1 = scmp.lt.s32.totalorder %s18_s13, %s18_s13 }
   0x5   :  { %p228_p0 = scmp.ne.s32.totalorder %s18_s13, %s227_s16  ;;  %p233_p2 = scmp.lt.s32.totalorder %s227_s16, %s227_s16 }
   0x7   :  { %p234_p3 = por %p233_p2, %p232_p1 }
   0x9   :  { %p235_p4 = pnand %p234_p3, %p228_p0 }
   0xb   :  { %238 = shalt.err (!%p235_p4)
}
   0xc   :  { %20 = dma.hbm_to_vmem [thread:$0]  %s324_s0, 128, %s18_s13, [#allocation3]  }
   0xd   :  { %s247_s19 = scalar_lea.vmem %s27_s15, 2048  ;;  %p252_p6 = scmp.lt.s32.totalorder %s27_s15, %s27_s15 }
   0xe   :  { %p248_p5 = scmp.ne.s32.totalorder %s27_s15, %s247_s19  ;;  %p253_p7 = scmp.lt.s32.totalorder %s247_s19, %s247_s19 }
  0x10   :  { %p254_p8 = por %p253_p7, %p252_p6 }
  0x12   :  { %p255_p9 = pnand %p254_p8, %p248_p5 }
  0x14   :  { %258 = shalt.err (!%p255_p9)
}
  0x15   :  { %s287_s20 = smov 128   ;;  %s288_s21 = smov 8  }
  0x16   :  { %32 = dma.hbm_to_vmem [thread:$0]  %s325_s1, 2048, %s27_s15, [#allocation6], %s287_s20, %s287_s20, %s288_s21  }
  0x17   :  { %279 = dma.done.wait [#allocation3], 128  }
  0x18   :  { %280 = vsyncadd [#allocation3], 4294967168 }
  0x19   :  { %281 = dma.done.wait [#allocation6], 2048  }
  0x1a   :  { %282 = vsyncadd [#allocation6], 4294965248  ;;  %v289_v0 = vmov 0.0   ;;  %vm290_vm0 = vmmov 0   ;;  %v70_v1 = vld [vmem:[#allocation5 + $0x78] sm:$0xff]  ;;  %v69_v2 = vld [vmem:[#allocation5 + $0x70] sm:$0xff] }
  0x1b   :  { %177 = vmatprep.subr.mxu0 %v289_v0  ;;  %209 = vmatprep.mubr.msk.f32.mxu0 %vm290_vm0, %v289_v0  ;;  %v68_v3 = vld [vmem:[#allocation5 + $0x68] sm:$0xff]  ;;  %v67_v4 = vld [vmem:[#allocation5 + $0x60] sm:$0xff]  ;;  %v66_v5 = vld [vmem:[#allocation5 + $0x58] sm:$0xff]  ;;  %s291_s24 = smov [#allocation7]  }
  0x1c   :  { %178 = vmatpush3.msra.mxu0 %v70_v1  ;;  %v65_v6 = vld [vmem:[#allocation5 + $0x50] sm:$0xff]  ;;  %v64_v7 = vld [vmem:[#allocation5 + $0x48] sm:$0xff]  ;;  %v63_v8 = vld [vmem:[#allocation5 + $0x40] sm:$0xff]  ;;  %s149_s25 = sshll.u32 %s291_s24, 4  ;;  %s150_s25 = int_to_ptr.vmem [resolvable:$true] %s149_s25 }
  0x1d   :  { %179 = vmatprep.subr.mxu0 %v289_v0  ;;  %v62_v9 = vld [vmem:[#allocation5 + $0x38] sm:$0xff]  ;;  %v61_v10 = vld [vmem:[#allocation5 + $0x30] sm:$0xff]  ;;  %v60_v11 = vld [vmem:[#allocation5 + $0x28] sm:$0xff]  ;;  %s259_s26 = scalar_lea.vmem %s150_s25, 128  ;;  %p264_p11 = scmp.lt.s32.totalorder %s150_s25, %s150_s25 }
  0x1e   :  { %180 = vmatpush3.msra.mxu0 %v69_v2  ;;  %v59_v12 = vld [vmem:[#allocation5 + $0x20] sm:$0xff]  ;;  %v58_v13 = vld [vmem:[#allocation5 + $0x18] sm:$0xff]  ;;  %v57_v14 = vld [vmem:[#allocation5 + $0x10] sm:$0xff]  ;;  %p260_p10 = scmp.ne.s32.totalorder %s150_s25, %s259_s26  ;;  %p265_p12 = scmp.lt.s32.totalorder %s259_s26, %s259_s26 }
  0x1f   :  { %181 = vmatprep.subr.mxu0 %v289_v0  ;;  %v56_v15 = vld [vmem:[#allocation5 + $0x8] sm:$0xff]  ;;  %v55_v16 = vld [vmem:[#allocation5] sm:$0xff]  ;;  %v54_v17 = vld [vmem:[#allocation2] sm:$0xff] }
  0x20   :  { %182 = vmatpush3.msra.mxu0 %v68_v3  ;;  %v159_v18 = vld [vmem:[%s326_s2] ss:$0 sm:$0xff]  ;;  %p266_p13 = por %p265_p12, %p264_p11 }
  0x21   :  { %183 = vmatprep.subr.mxu0 %v289_v0 }
  0x22   :  { %184 = vmatpush3.msra.mxu0 %v67_v4  ;;  %p267_p0 = pnand %p266_p13, %p260_p10 }
  0x23   :  { %185 = vmatprep.subr.mxu0 %v289_v0 }
  0x24   :  { %186 = vmatpush3.msra.mxu0 %v66_v5 }
  0x25   :  { %187 = vmatprep.subr.mxu0 %v289_v0 }
  0x26   :  { %188 = vmatpush3.msra.mxu0 %v65_v6 }
  0x27   :  { %189 = vmatprep.subr.mxu0 %v289_v0 }
  0x28   :  { %190 = vmatpush3.msra.mxu0 %v64_v7 }
  0x29   :  { %191 = vmatprep.subr.mxu0 %v289_v0 }
  0x2a   :  { %192 = vmatpush3.msra.mxu0 %v63_v8 }
  0x2b   :  { %193 = vmatprep.subr.mxu0 %v289_v0 }
  0x2c   :  { %194 = vmatpush3.msra.mxu0 %v62_v9 }
  0x2d   :  { %195 = vmatprep.subr.mxu0 %v289_v0 }
  0x2e   :  { %196 = vmatpush3.msra.mxu0 %v61_v10 }
  0x2f   :  { %197 = vmatprep.subr.mxu0 %v289_v0 }
  0x30   :  { %198 = vmatpush3.msra.mxu0 %v60_v11 }
  0x31   :  { %199 = vmatprep.subr.mxu0 %v289_v0 }
  0x32   :  { %200 = vmatpush3.msra.mxu0 %v59_v12 }
  0x33   :  { %201 = vmatprep.subr.mxu0 %v289_v0 }
  0x34   :  { %202 = vmatpush3.msra.mxu0 %v58_v13 }
  0x35   :  { %203 = vmatprep.subr.mxu0 %v289_v0 }
  0x36   :  { %204 = vmatpush3.msra.mxu0 %v57_v14 }
  0x37   :  { %205 = vmatprep.subr.mxu0 %v289_v0 }
  0x38   :  { %206 = vmatpush3.msra.mxu0 %v56_v15 }
  0x39   :  { %207 = vmatprep.subr.mxu0 %v289_v0 }
  0x3a   :  { %208 = vmatpush3.msra.mxu0 %v55_v16 }
  0x3b   :  { %210 = vmatmul.mubr.f32.vlgmr.msra.gmra.mxu0 %v54_v17 }
  0xfb   :  { %v137_v19 = vpop.f32.mrf.mxu0 }
  0xfc   :  { %v141_v20 = vadd.f32 %v159_v18, %v137_v19 }
  0xfd   :  { %v211_v21 = vpop.f32.mrf.mxu0 }
  0xfe   :  { %142 = vst [vmem:[#allocation7] sm:$0xff] %v141_v20 }
  0xff   :  { %270 = shalt.err (!%p267_p0)
}
 0x100   :  { %152 = dma.vmem_to_hbm [thread:$0]  %s150_s25, 128, %s327_s3, [#allocation4]  }
 0x101   :  { %283 = dma.done.wait [#allocation4], 128  }
 0x102   :  { %284 = vsyncadd [#allocation4], 4294967168 }
 0x103   :  { %156 = vsyncpa [#allocation3], 1 }
 0x104   :  { %157 = vsyncpa [#allocation6], 1 }
 0x105   :  { %158 = vsyncpa [#allocation4], 1 }

</bundles_post_ra>
